<compile_context>
chip_gen: v6e
topology: v6e:2x2x1
jax: 0.10.0
libtpu: 0.0.40
codegen_flags: <defaults>
</compile_context>

<pallas_src>
import functools

import numpy as np

import jax
import jax.numpy as jnp
from jax.experimental import pallas as pl
from jax.experimental.pallas import tpu as pltpu


def _yolo_head_kernel(p_ref, x_ref, o_ref, *, tile_h):
    """p_ref: (4, W*C) params; x_ref / o_ref: (1, TH, W*C) blocks."""
    row_start = (pl.program_id(1) * tile_h).astype(jnp.float32)

    v = x_ref[0].astype(jnp.float32)          # (TH, W*C)
    p = p_ref[...]                            # (4, W*C)
    scale = p[0:1, :]                         # per-lane output multiplier
    is_exp = p[1:2, :]                        # 1.0 where the channel uses exp (tw/th)
    col_term = p[2:3, :]                      # col index where channel is tx, else 0
    row_mask = p[3:4, :]                      # 1.0 where channel is ty, else 0

    sig = 1.0 / (1.0 + jnp.exp(-v))
    ex = jnp.exp(v)
    base = jnp.where(is_exp > 0.5, ex, sig)

    row = jax.lax.broadcasted_iota(jnp.int32, v.shape, 0).astype(jnp.float32)
    row = row + row_start                     # global row index per sublane

    out = scale * (base + col_term + row_mask * row)
    o_ref[0] = out.astype(o_ref.dtype)


def _build_params(anchors, mask, classes, input_width, input_height, h, w):
    """Precompute the (4, W*C) per-lane parameter table (host side, static)."""
    nb = len(mask)
    bd = 5 + classes
    c = nb * bd

    c_idx = np.arange(c)
    k = c_idx % bd                            # position inside one box record

    scale_c = np.ones(c, np.float32)
    scale_c[k == 0] = 1.0 / w
    scale_c[k == 1] = 1.0 / h
    for b in range(nb):
        pw, ph = anchors[mask[b]]
        scale_c[b * bd + 2] = float(pw) / float(input_width)
        scale_c[b * bd + 3] = float(ph) / float(input_height)

    is_exp_c = ((k == 2) | (k == 3)).astype(np.float32)
    row_mask_c = (k == 1).astype(np.float32)
    col_mask_c = (k == 0).astype(np.float32)

    w_idx = np.arange(w, dtype=np.float32)
    # flattened lane index = w * C + c  (row-major reshape of (H, W, C) -> (H, W*C))
    col_term = (w_idx[:, None] * col_mask_c[None, :]).reshape(-1)
    scale = np.tile(scale_c, w)
    is_exp = np.tile(is_exp_c, w)
    row_mask = np.tile(row_mask_c, w)

    return jnp.asarray(np.stack([scale, is_exp, col_term, row_mask]).astype(np.float32))


def _choose_tile_h(h, wc, itemsize, target_bytes=2 * 1024 * 1024):
    """Largest H-tile that divides H, keeps (8,128) tiling legal and ~<=2 MiB blocks.

    Prefers >=2 H tiles so the grid has a second parallel axis even at batch 1.
    """
    cands = [d for d in range(1, h + 1) if h % d == 0 and (d == h or d % 8 == 0)]
    fitting = [d for d in cands if d * wc * itemsize <= target_bytes]
    if not fitting:
        return min(cands)
    multi = [d for d in fitting if h // d >= 2]
    return max(multi) if multi else max(fitting)


def yolo_head_pallas(x, anchors, mask, classes, input_width, input_height):
    """x: (N, C, H, W) NCHW. Returns detections of shape (N, H*W*num_boxes, 5+classes)."""
    n, c, h, w = x.shape
    nb = len(mask)
    bd = 5 + classes
    if c != nb * bd:
        raise ValueError("no. filters != no. boxes * (5 + no. classes)")

    # One NCHW -> NHWC transpose (layout glue); everything afterwards is lane-dense.
    # TODO(synk): if the surrounding network is kept NHWC end-to-end this transpose goes away.
    x_nhwc = jnp.transpose(x, (0, 2, 3, 1))
    wc = w * c
    x_flat = x_nhwc.reshape(n, h, wc)         # contiguous (free) reshape

    params = _build_params(anchors, mask, classes, input_width, input_height, h, w)

    tile_h = _choose_tile_h(h, wc, jnp.dtype(x.dtype).itemsize)
    grid = (n, h // tile_h)

    kernel = functools.partial(_yolo_head_kernel, tile_h=tile_h)
    out_flat = pl.pallas_call(
        kernel,
        out_shape=jax.ShapeDtypeStruct((n, h, wc), x.dtype),
        grid=grid,
        in_specs=[
            pl.BlockSpec((4, wc), lambda i, j: (0, 0)),
            pl.BlockSpec((1, tile_h, wc), lambda i, j: (i, j, 0)),
        ],
        out_specs=pl.BlockSpec((1, tile_h, wc), lambda i, j: (i, j, 0)),
        compiler_params=pltpu.CompilerParams(
            dimension_semantics=("parallel", "parallel")),
    )(params, x_flat)

    # Free reshape to the PyTorch output view (N, H*W*num_boxes, 5+classes).
    return out_flat.reshape(n, h * w * nb, bd)


class YOLOv3Layer:
    """JAX/Pallas port of the darknet YOLOv3Layer forward (inference path)."""

    def __init__(self, input_width, input_height, anchors, mask, classes=80,
                 ignore_thresh=0.5, truth_thresh=1.0):
        self.anchors = list(anchors)
        self.mask = list(mask)
        self.classes = classes
        self.input_width = input_width
        self.input_height = input_height
        self.ignore_thresh = ignore_thresh
        self.truth_thresh = truth_thresh

    def __call__(self, x, y=None):
        # TODO(synk): training-mode loss (per-truth-box IoU matching + scatter loops)
        # is data-dependent host-style control flow with no clean Pallas equivalent;
        # inference path only, loss = -1 (matches eval-mode PyTorch behavior).
        det = yolo_head_pallas(x, self.anchors, self.mask, self.classes,
                               self.input_width, self.input_height)
        return det, -1


def _ref_forward(x, anchors, mask, classes, input_width, input_height):
    """Pure-JAX reference matching the PyTorch eval-mode forward."""
    n, c, h, w = x.shape
    bd = 5 + classes
    nb = len(mask)
    xt = jnp.transpose(x, (0, 2, 3, 1)).reshape(n, h, w, nb, bd).astype(jnp.float32)
    sig = jax.nn.sigmoid(xt)
    col = jnp.arange(w, dtype=jnp.float32).reshape(1, 1, w, 1)
    row = jnp.arange(h, dtype=jnp.float32).reshape(1, h, 1, 1)
    pw = jnp.array([anchors[m][0] for m in mask], dtype=jnp.float32).reshape(1, 1, 1, nb)
    ph = jnp.array([anchors[m][1] for m in mask], dtype=jnp.float32).reshape(1, 1, 1, nb)
    tx = (sig[..., 0] + col) / w
    ty = (sig[..., 1] + row) / h
    tw = pw / input_width * jnp.exp(xt[..., 2])
    th = ph / input_height * jnp.exp(xt[..., 3])
    rest = sig[..., 4:]
    out = jnp.concatenate(
        [tx[..., None], ty[..., None], tw[..., None], th[..., None], rest], axis=-1)
    return out.reshape(n, h * w * nb, bd)


if __name__ == "__main__":
    key = jax.random.PRNGKey(0)

    # Small but structurally faithful config: 3 boxes, 3 classes -> C = 3*(5+3) = 24.
    classes = 3
    anchors = [(10, 13), (16, 30), (33, 23), (30, 61), (62, 45), (59, 119)]
    mask = [3, 4, 5]
    nb, bd = len(mask), 5 + classes
    N, H, W = 2, 16, 16
    C = nb * bd

    x = jax.random.normal(key, (N, C, H, W), dtype=jnp.float32)

    layer = YOLOv3Layer(input_width=416, input_height=416, anchors=anchors,
                        mask=mask, classes=classes)
    det, loss = layer(x)
    det = jax.block_until_ready(det)

    ref = _ref_forward(x, anchors, mask, classes, 416, 416)

    assert det.shape == (N, H * W * nb, bd), (det.shape, (N, H * W * nb, bd))
    assert loss == -1
    max_err = float(jnp.max(jnp.abs(det - ref)))
    assert jnp.allclose(det, ref, atol=1e-5, rtol=1e-5), f"max abs err = {max_err}"
    print("KERNEL_OK")
</pallas_src>

<mosaic_0001>
module attributes {stable_mosaic.version = 11 : i64} {
  func.func @_yolo_head_kernel(%arg0: i32, %arg1: i32, %arg2: memref<4x384xf32, #tpu.memory_space<vmem>>, %arg3: memref<1x8x384xf32, #tpu.memory_space<vmem>>, %arg4: memref<1x8x384xf32, #tpu.memory_space<vmem>>) attributes {dimension_semantics = [#tpu.dimension_semantics<parallel>, #tpu.dimension_semantics<parallel>], iteration_bounds = array<i64: 2, 2>, scalar_prefetch = 0 : i64, scratch_operands = 0 : i64, tpu.core_type = #tpu.core_type<tc>, window_params = [{pipeline_mode = #tpu.pipeline_mode<synchronous>, transform_indices = @transform_0, window_bounds = array<i64: 4, 384>}, {transform_indices = @transform_1, window_bounds = array<i64: 1, 8, 384>}, {transform_indices = @transform_2, window_bounds = array<i64: 1, 8, 384>}]} {
    %c8_i32 = arith.constant 8 : i32
    %0 = arith.muli %arg1, %c8_i32 : i32
    %1 = arith.sitofp %0 : i32 to f32
    %c0 = arith.constant 0 : index
    %c0_0 = arith.constant 0 : index
    %c0_1 = arith.constant 0 : index
    %2 = vector.load %arg3[%c0, %c0_0, %c0_1] : memref<1x8x384xf32, #tpu.memory_space<vmem>>, vector<1x8x384xf32>
    %3 = vector.shape_cast %2 : vector<1x8x384xf32> to vector<8x384xf32>
    %c0_2 = arith.constant 0 : index
    %c0_3 = arith.constant 0 : index
    %4 = vector.load %arg2[%c0_2, %c0_3] : memref<4x384xf32, #tpu.memory_space<vmem>>, vector<4x384xf32>
    %5 = vector.extract_strided_slice %4 {offsets = [0, 0], sizes = [1, 384], strides = [1, 1]} : vector<4x384xf32> to vector<1x384xf32>
    %6 = vector.extract_strided_slice %4 {offsets = [1, 0], sizes = [1, 384], strides = [1, 1]} : vector<4x384xf32> to vector<1x384xf32>
    %7 = vector.extract_strided_slice %4 {offsets = [2, 0], sizes = [1, 384], strides = [1, 1]} : vector<4x384xf32> to vector<1x384xf32>
    %8 = vector.extract_strided_slice %4 {offsets = [3, 0], sizes = [1, 384], strides = [1, 1]} : vector<4x384xf32> to vector<1x384xf32>
    %cst = arith.constant 0.000000e+00 : f32
    %9 = vector.broadcast %cst : f32 to vector<8x384xf32>
    %10 = arith.subf %9, %3 : vector<8x384xf32>
    %11 = math.exp %10 : vector<8x384xf32>
    %cst_4 = arith.constant 1.000000e+00 : f32
    %12 = vector.broadcast %cst_4 : f32 to vector<8x384xf32>
    %13 = arith.addf %12, %11 : vector<8x384xf32>
    %cst_5 = arith.constant 1.000000e+00 : f32
    %14 = vector.broadcast %cst_5 : f32 to vector<8x384xf32>
    %15 = arith.divf %14, %13 : vector<8x384xf32>
    %16 = math.exp %3 : vector<8x384xf32>
    %cst_6 = arith.constant 5.000000e-01 : f32
    %17 = vector.broadcast %cst_6 : f32 to vector<1x384xf32>
    %18 = arith.cmpf ogt, %6, %17 : vector<1x384xf32>
    %19 = vector.shape_cast %18 : vector<1x384xi1> to vector<1x384xi1>
    %20 = vector.broadcast %19 : vector<1x384xi1> to vector<8x384xi1>
    %21 = arith.select %20, %16, %15 : vector<8x384xi1>, vector<8x384xf32>
    %22 = tpu.iota {dimensions = array<i32: 0>} : vector<8x384xi32>
    %23 = arith.sitofp %22 : vector<8x384xi32> to vector<8x384xf32>
    %24 = vector.broadcast %1 : f32 to vector<8x384xf32>
    %25 = arith.addf %23, %24 : vector<8x384xf32>
    %26 = vector.broadcast %7 : vector<1x384xf32> to vector<8x384xf32>
    %27 = arith.addf %21, %26 : vector<8x384xf32>
    %28 = vector.broadcast %8 : vector<1x384xf32> to vector<8x384xf32>
    %29 = arith.mulf %28, %25 : vector<8x384xf32>
    %30 = arith.addf %27, %29 : vector<8x384xf32>
    %31 = vector.broadcast %5 : vector<1x384xf32> to vector<8x384xf32>
    %32 = arith.mulf %31, %30 : vector<8x384xf32>
    %c0_7 = arith.constant 0 : index
    %c0_8 = arith.constant 0 : index
    %c0_9 = arith.constant 0 : index
    %33 = vector.load %arg4[%c0_7, %c0_8, %c0_9] : memref<1x8x384xf32, #tpu.memory_space<vmem>>, vector<1x8x384xf32>
    %34 = vector.shape_cast %33 : vector<1x8x384xf32> to vector<8x384xf32>
    %35 = vector.shape_cast %32 : vector<8x384xf32> to vector<1x8x384xf32>
    tpu.vector_store %arg4[%c0_7, %c0_8, %c0_9], %35 {strides = array<i32>} : memref<1x8x384xf32, #tpu.memory_space<vmem>>, vector<1x8x384xf32>,
    return
  }
  func.func @transform_0(%arg0: i32, %arg1: i32) -> (i32, i32) {
    %c0_i32 = arith.constant 0 : i32
    %c0_i32_0 = arith.constant 0 : i32
    %c0_i32_1 = arith.constant 0 : i32
    return %c0_i32, %c0_i32_0 : i32, i32
  }
  func.func @transform_1(%arg0: i32, %arg1: i32) -> (i32, i32, i32) {
    %c0_i32 = arith.constant 0 : i32
    %c0_i32_0 = arith.constant 0 : i32
    return %arg0, %arg1, %c0_i32 : i32, i32, i32
  }
  func.func @transform_2(%arg0: i32, %arg1: i32) -> (i32, i32, i32) {
    %c0_i32 = arith.constant 0 : i32
    %c0_i32_0 = arith.constant 0 : i32
    return %arg0, %arg1, %c0_i32 : i32, i32, i32
  }
}

</mosaic_0001>

<bundles_post_ra>
// kernel: tpu_custom_call.1
= control target key start
LH: loop header
LB: loop body
LE: loop exit
PB: predicated region body
PF: predicated region fallthrough
CT: control target
= control target key end

     0   :  { %s977_s0 = inlined_call_operand.hbm [shape: f32[4,384], index: 0, kind: input, shape index: {}]   ;;  %s978_s1 = inlined_call_operand.hbm [shape: f32[2,16,384], index: 1, kind: input, shape index: {}]   ;;  %s979_s2 = inlined_call_operand.hbm [shape: f32[2,16,384], index: 2, kind: output, shape index: {}]  }
   0x1   :  { %984 = sst [smem:[#allocation15_spill]] %s977_s0 }
   0x2   :  { %7 = vsyncpa [#allocation3], 0 }
   0x3   :  { %8 = vsyncpa [#allocation6], 0 }
   0x4   :  { %10 = vsyncpa [#allocation6 + $0x1], 0 }
   0x5   :  { %11 = vsyncpa [#allocation4], 0 }
   0x6   :  { %13 = vsyncpa [#allocation4 + $0x1], 0  ;;  %s776_s9 = smov 0   ;;  %s778_s10 = smov 0  }
   0x7   :  { %s780_s11 = smov 0   ;;  %s782_s12 = smov 0  }
   0x8   :  { %s784_s13 = smov 0   ;;  %s786_s14 = smov 0  }
   0x9   :  { %s788_s15 = smov 0   ;;  %s790_s16 = smov 0  }
   0xa LB: > { %985 = sst [smem:[#allocation11_spill]] %s751_s15  ;;  %s475_s17 = sadd.s32 4294967295, %s755_s16   ;;  %s755_s16 = sphi %s790_s16, %s19_s16   ;;  %s751_s15 = sphi %s788_s15, %s1001_s15   ;;  %s747_s14 = sphi %s786_s14, %s1006_s14   ;;  %s743_s13 = sphi %s784_s13, %s999_s13   ;;  %s739_s12 = sphi %s782_s12, %s1005_s12   ;;  %s735_s11 = sphi %s780_s11, %s1004_s11   ;;  %s731_s10 = sphi %s778_s10, %s1003_s10   ;;  %s727_s9 = sphi %s776_s9, %s1002_s9  }
   0xb   : > { %s476_s18 = sadd.s32 4294967294, %s755_s16   ;;  %p74_p0 = scmp.ne.s32.totalorder %s731_s10, %s727_s9 }
   0xc   : > { %p820_p1 = scmp.eq.s32.totalorder %s475_s17, 0  ;;  %p824_p2 = scmp.eq.s32.totalorder %s475_s17, 3 }
   0xd   : > { %p106_p3 = scmp.eq.s32.totalorder %s476_s18, 3  ;;  %p477_p5 = scmp.ge.s32.totalorder %s755_s16, 1 }
   0xe   : > { %p830_p4 = por %p820_p1, %p74_p0  ;;  %p113_p7 = scmp.lt.s32.totalorder %s755_s16, 5 }
   0xf   : > { %p835_p6 = por %p106_p3, %p74_p0  ;;  %s757_s24 = smov [#allocation2]  }
  0x10   : > { %p840_p8 = pnand %p477_p5, %p113_p7  ;;  %s126_s25 = sshll.u32 %s757_s24, 4  ;;  %s127_s25 = int_to_ptr.vmem [resolvable:$true] %s126_s25 }
  0x11   : > { %s989_s22 = scalar_select %p835_p6, 1, 0 }
  0x12   : > { %p501_p9 = pneg %p840_p8  ;;  %s28_s26 = sadd.s32 1, %s747_s14 }
  0x13   : > { %990 = sst [smem:[#allocation12_spill]] %s989_s22  ;;  %s612_s27 = scalar_lea.vmem %s127_s25, 192 }
  0x14   : > { %p502_p10 = pnand %p501_p9, %p820_p1  ;;  %p613_p12 = scmp.ne.s32.totalorder %s127_s25, %s612_s27 }
  0x15   : > { %p620_p3 = scmp.lt.s32.totalorder %s127_s25, %s127_s25  ;;  %p621_p6 = scmp.lt.s32.totalorder %s612_s27, %s612_s27 }
  0x16   : > { %p603_p11 = pneg %p502_p10 }
  0x17   : > { %p622_p5 = por %p621_p6, %p620_p3 }
  0x18   : > { %p615_p13 = pnand %p613_p12, %p603_p11 }
  0x1a   : > { %p616_p0 = pneg %p615_p13 }
  0x1c   : > { %p623_p7 = pnand %p622_p5, %p616_p0 }
  0x1e   : > { %626 = shalt.err (!%p623_p7)
}
  0x1f   : > { %s992_s0 = sld [smem:[#allocation15_spill]]  ;;  %p29_p9 = scmp.ge.s32.totalorder %s28_s26, 2 }
  0x20   : > { %s31_s30 = sadd.s32 1, %s751_s15  ;;  %s61_s3 = sadd.s32 1, %s735_s11 }
  0x21   : > { %p68_p6 = scmp.ne.s32.totalorder %s735_s11, %s731_s10  ;;  %s1008_s26 = smov (%p29_p9, %s28_s26), 0 }
  0x22   : > { %993 = sst [smem:[#allocation13_spill]] %s1008_s26  ;;  %s1010_s30 = smov (!%p29_p9, %s31_s30), %s751_s15 }
  0x23   : > { %s57_s4 = ssub.s32 %s747_s14, %s1008_s26  ;;  %p69_p11 = scmp.eq.s32.totalorder %s755_s16, 0 }
  0x24   : > { %p33_p12 = scmp.ge.s32.totalorder %s1010_s30, 2  ;;  %p864_p13 = por %p824_p2, %p68_p6 }
  0x25   : > { %504 = dma.hbm_to_vmem [thread:$0]  (!%p502_p10), %s992_s0, 192, %s127_s25, [#allocation3]  }
  0x26   : > { %p70_p10 = por %p69_p11, %p68_p6  ;;  %p514_p0 = scmp.lt.s32.totalorder %s755_s16, 4 }
  0x27   : > { %s1012_s30 = smov (%p33_p12, %s1010_s30), 0  ;;  %s137_s6 = sand.u32 1, %s735_s11  }
  0x28   : > { %995 = sst [smem:[#allocation14_spill]] %s1012_s30  ;;  %s488_s7 = smul.u32 3, %s747_s14 }
  0x29   : > { %s56_s8 = ssub.s32 %s751_s15, %s1012_s30  ;;  %s487_s18 = smul.u32 24, %s137_s6 }
  0x2a   : > { %s58_s17 = sor.u32 %s57_s4, %s56_s8  ;;  %s489_s24 = smul.u32 6, %s751_s15 }
  0x2b   : > { %p59_p3 = scmp.eq.s32.totalorder %s58_s17, 0  ;;  %p876_p5 = pnand %p514_p0, %p70_p10 }
  0x2c   : > { %s147_s27 = sadd.s32 %s489_s24, %s488_s7  ;;  %s141_s28 = scalar_lea.vmem [#allocation5], %s487_s18 }
  0x2d   : > { %s881_s20 = scalar_select %p59_p3, %s735_s11, %s61_s3  }
  0x2e   : > { %s151_s29 = sshll.u32 %s141_s28, 4  ;;  %s480_s0 = sshll.u32 %s147_s27, 7  ;;  %s152_s29 = int_to_ptr.vmem [resolvable:$true] %s151_s29 }
  0x2f   : > { %s149_s30 = scalar_lea.hbm %s978_s1, %s480_s0  ;;  %s138_s4 = scalar_lea.sflag [#allocation6], %s137_s6 }
  0x30   : > { %p629_p2 = pneg %p876_p5  ;;  %s640_s8 = scalar_lea.vmem %s152_s29, 384 }
  0x31   : > { %p641_p7 = scmp.ne.s32.totalorder %s152_s29, %s640_s8  ;;  %s758_s17 = smov [#allocation5]  }
  0x32   : > { %s645_s15 = sshll.u32 %s758_s17, 4  ;;  %s646_s15 = int_to_ptr.vmem [resolvable:$false] %s645_s15 }
  0x33   : > { %p643_p9 = pnand %p641_p7, %p629_p2  ;;  %s647_s3 = scalar_lea.vmem %s646_s15, 768 }
  0x34   : > { %p648_p11 = scmp.lt.s32.totalorder %s152_s29, %s646_s15  ;;  %p649_p12 = scmp.lt.s32.totalorder %s647_s3, %s640_s8 }
  0x35   : > { %p644_p6 = pneg %p643_p9 }
  0x36   : > { %p650_p10 = por %p649_p12, %p648_p11 }
  0x38   : > { %p651_p0 = pnand %p650_p10, %p644_p6 }
  0x3a   : > { %654 = shalt.err (!%p651_p0)
}
  0x3b   : > { %508 = dma.hbm_to_vmem [thread:$0]  (!%p876_p5), %s149_s30, 384, %s152_s29, %s138_s4  }
  0x3c   : > { %160 = sbr.rel (%p840_p8) target bundleno = 129 (0x81), region = 28 }
  0x41   : > { %714 = dma.done.wait (%p820_p1), [#allocation3], 192  }
  0x42   : > { %716 = vsyncadd (%p820_p1), [#allocation3], 4294967104  ;;  %s897_s0 = sand.u32 1, %s731_s10  }
  0x43   : > { %s490_s15 = smul.u32 24, %s897_s0  ;;  %s167_s22 = scalar_lea.sflag [#allocation6], %s897_s0 }
  0x45   : > { %s170_s26 = scalar_lea.vmem [#allocation5], %s490_s15 }
  0x46   : > { %718 = dma.done.wait (%p830_p4), %s167_s22, 384  }
  0x47   : > { %720 = vsyncadd (%p830_p4), %s167_s22, 4294966912  ;;  %v193_v0 = vld [vmem:[%s170_s26] sm:$0xff]  ;;  %v194_v1 = vld [vmem:[%s170_s26 + $0x8] sm:$0xff]  ;;  %v226_v9 = vlaneseq  ;;  %s483_s19 = sshll.u32 %s739_s12, 3  ;;  %v759_v19 = vmov 0   ;;  %s491_s23 = smul.u32 3, %s739_s12 }
  0x48   : > { %v198_v2 = vsub.f32 0.0, %v193_v0  ;;  %v199_v3 = vsub.f32 0.0, %v194_v1  ;;  %v195_v6 = vld [vmem:[%s170_s26 + $0x10] sm:$0xff]  ;;  %v216_v11 = vmul.f32 1.442695, %v193_v0  ;;  %s192_s21 = scvt.s32.f32 %s483_s19  ;;  %s492_s30 = smul.u32 6, %s743_s13 }
  0x49   : > { %v200_v7 = vsub.f32 0.0, %v195_v6  ;;  %v907_v10 = vld [vmem:[#allocation2] sm:$0xff]  ;;  %v227_v12 = vshrl.u32 %v226_v9, 7  ;;  %v218_v13 = vmul.f32 1.442695, %v194_v1  ;;  %s190_s12 = scalar_lea.vmem [#allocation7], %s490_s15 }
  0x4a   : > { %v201_v4 = vmul.f32 1.442695, %v198_v2  ;;  %v203_v5 = vmul.f32 1.442695, %v199_v3  ;;  %vm222_vm0 = vcmp.gt.f32.partialorder %v907_v10, 0.5  ;;  %v259_v34 = vstv %s192_s21  ;;  %s372_s6 = sadd.s32 %s492_s30, %s491_s23  ;;  %s376_s7 = sshll.u32 %s190_s12, 4  ;;  %s927_s7 = int_to_ptr.vmem [resolvable:$true] %s376_s7 }
  0x4b   : > { %v205_v8 = vmul.f32 1.442695, %v200_v7  ;;  %v228_v17 = vsub.s32 1, %v227_v12  ;;  %v224_v20 = vsel %vm222_vm0, 1, %v759_v19  ;;  %v232_v21 = vsub.s32 5, %v227_v12  ;;  %s484_s13 = sshll.u32 %s372_s6, 7 }
  0x4c   : > { %583 = vpow2.f32 %v201_v4  ;;  %v295_v22 = vsub.s32 3, %v227_v12  ;;  %v911_v23 = vld [vmem:[#allocation2 + $0x8] sm:$0xf]  ;;  %v220_v24 = vmul.f32 1.442695, %v195_v6  ;;  %v299_v25 = vsub.s32 7, %v227_v12  ;;  %s374_s25 = scalar_lea.hbm %s979_s2, %s484_s13 }
  0x4d   : > { %585 = vpow2.f32 %v203_v5  ;;  %v229_v26 = vrot.slane %v224_v20, %v228_v17  ;;  %v265_v27 = vsub.s32 2, %v227_v12  ;;  %v233_v29 = vrot.slane %v224_v20, %v232_v21  ;;  %s360_s27 = scalar_lea.sflag [#allocation4], %s897_s0  ;;  %s655_s28 = scalar_lea.vmem %s927_s7, 384 }
  0x4e   : > { %587 = vpow2.f32 %v205_v8  ;;  %v269_v30 = vsub.s32 6, %v227_v12  ;;  %vm223_vm1 = vcmp.gt.f32.partialorder %v911_v23, 0.5  ;;  %v258_v31 = vcvt.s32.f32 %v227_v12  ;;  %p656_p1 = scmp.ne.s32.totalorder %s927_s7, %s655_s28  ;;  %s760_s29 = smov [#allocation7]  }
  0x4f   : > { %589 = vpow2.f32 %v216_v11  ;;  %v296_v32 = vrot.slane %v907_v10, %v295_v22  ;;  %v328_v35 = vsub.s32 0, %v227_v12  ;;  %v300_v36 = vrot.slane %v907_v10, %v299_v25  ;;  %s659_s4 = sshll.u32 %s760_s29, 4  ;;  %s660_s4 = int_to_ptr.vmem [resolvable:$false] %s659_s4 }
  0x50   : > { %591 = vpow2.f32 %v218_v13  ;;  %v241_v37 = vrot.slane %v229_v26, %v228_v17  ;;  %v266_v38 = vrot.slane %v907_v10, %v265_v27  ;;  %v225_v39 = vsel %vm223_vm1, 1, %v759_v19  ;;  %p657_p4 = pnand %p656_p1, %p864_p13  ;;  %s661_s8 = scalar_lea.vmem %s660_s4, 768 }
  0x51   : > { %v245_v40 = vrot.slane %v233_v29, %v228_v17  ;;  %v270_v41 = vrot.slane %v907_v10, %v269_v30  ;;  %v332_v42 = vsub.s32 4, %v227_v12  ;;  %v260_v43 = vadd.f32 %v259_v34, %v258_v31  ;;  %p662_p3 = scmp.lt.s32.totalorder %s927_s7, %s660_s4  ;;  %p663_p5 = scmp.lt.s32.totalorder %s661_s8, %s655_s28 }
  0x52   : > { %v311_v44 = vrot.slane %v296_v32, %v295_v22  ;;  %v315_v45 = vrot.slane %v300_v36, %v295_v22  ;;  %v237_v46 = vrot.slane %v225_v39, %v228_v17  ;;  %vm250_vm2 = vcmp.eq.s32.totalorder %v241_v37, 1  ;;  %p658_p8 = pneg %p657_p4 }
  0x53   : > { %v281_v48 = vrot.slane %v266_v38, %v265_v27  ;;  %v329_v49 = vrot.slane %v907_v10, %v328_v35  ;;  %vm251_vm3 = vcmp.eq.s32.totalorder %v245_v40, 1  ;;  %v285_v51 = vrot.slane %v270_v41, %v265_v27  ;;  %p664_p2 = por %p663_p5, %p662_p3 }
  0x54   : > { %v333_v52 = vrot.slane %v907_v10, %v332_v42  ;;  %v304_v53 = vrot.slane %v911_v23, %v295_v22  ;;  %v320_v55 = vmul.f32 %v311_v44, %v260_v43  ;;  %v321_v58 = vmul.f32 %v315_v45, %v260_v43 }
  0x55   : > { %v249_v59 = vrot.slane %v237_v46, %v228_v17  ;;  %v274_v60 = vrot.slane %v911_v23, %v265_v27  ;;  %v344_v62 = vrot.slane %v329_v49, %v328_v35  ;;  %v337_v7 = vrot.slane %v911_v23, %v328_v35  ;;  %p665_p7 = pnand %p664_p2, %p658_p8 }
  0x56   : > { %v348_v1 = vrot.slane %v333_v52, %v328_v35  ;;  %v319_v2 = vrot.slane %v304_v53, %v295_v22 }
  0x57   : > { %vm252_vm4 = vcmp.eq.s32.totalorder %v249_v59, 1  ;;  %v289_v6 = vrot.slane %v274_v60, %v265_v27 }
  0x58   : > { %v322_v11 = vmul.f32 %v319_v2, %v260_v43 }
  0x59   : > { %v584_v14 = vpop.eup %583 }
  0x5a   : > { %v586_v15 = vpop.eup %585  ;;  %v207_v16 = vadd.f32 1.0, %v584_v14  ;;  %v352_v14 = vrot.slane %v337_v7, %v328_v35 }
  0x5b   : > { %v208_v18 = vadd.f32 1.0, %v586_v15  ;;  %v588_v28 = vpop.eup %587 }
  0x5c   : > { %593 = vrcp.f32 %v207_v16  ;;  %v209_v33 = vadd.f32 1.0, %v588_v28  ;;  %v590_v47 = vpop.eup %589 }
  0x5d   : > { %595 = vrcp.f32 %v208_v18  ;;  %v592_v50 = vpop.eup %591 }
  0x5e   : > { %597 = vpow2.f32 %v220_v24 }
  0x5f   : > { %599 = vrcp.f32 %v209_v33 }
  0x69   : > { %v594_v54 = vpop.eup %593 }
  0x6a   : > { %v596_v56 = vpop.eup %595  ;;  %v253_v57 = vsel %vm250_vm2, %v590_v47, %v594_v54 }
  0x6b   : > { %v290_v61 = vadd.f32 %v281_v48, %v253_v57  ;;  %v254_v63 = vsel %vm251_vm3, %v592_v50, %v596_v56  ;;  %v598_v4 = vpop.eup %597 }
  0x6c   : > { %v291_v0 = vadd.f32 %v285_v51, %v254_v63  ;;  %v600_v9 = vpop.eup %599 }
  0x6d   : > { %v323_v3 = vadd.f32 %v320_v55, %v290_v61  ;;  %v255_v12 = vsel %vm252_vm4, %v598_v4, %v600_v9 }
  0x6e   : > { %v324_v5 = vadd.f32 %v321_v58, %v291_v0  ;;  %v292_v13 = vadd.f32 %v289_v6, %v255_v12 }
  0x6f   : > { %v353_v8 = vmul.f32 %v344_v62, %v323_v3 }
  0x70   : > { %v354_v10 = vmul.f32 %v348_v1, %v324_v5  ;;  %v325_v15 = vadd.f32 %v322_v11, %v292_v13 }
  0x71   : > { %356 = vst [vmem:[%s190_s12] sm:$0xff] %v353_v8 }
  0x72   : > { %357 = vst [vmem:[%s190_s12 + $0x8] sm:$0xff] %v354_v10  ;;  %v355_v16 = vmul.f32 %v352_v14, %v325_v15 }
  0x74   : > { %358 = vst [vmem:[%s190_s12 + $0x10] sm:$0xff] %v355_v16 }
  0x75   : > { %668 = shalt.err (!%p665_p7)
}
  0x76   : > { %s669_s17 = scalar_lea.hbm %s374_s25, 384  ;;  %s673_s15 = scalar_lea.hbm %s979_s2, 1536 }
  0x77   : > { %p670_p9 = scmp.ne.s32.totalorder %s374_s25, %s669_s17  ;;  %p674_p12 = scmp.lt.s32.totalorder %s374_s25, %s979_s2 }
  0x78   : > { %p675_p10 = scmp.lt.s32.totalorder %s673_s15, %s669_s17 }
  0x79   : > { %p671_p6 = pnand %p670_p9, %p864_p13 }
  0x7a   : > { %p676_p0 = por %p675_p10, %p674_p12 }
  0x7b   : > { %p672_p11 = pneg %p671_p6 }
  0x7d   : > { %p677_p1 = pnand %p676_p0, %p672_p11 }
  0x7f   : > { %680 = shalt.err (!%p677_p1)
}
  0x80   : > { %499 = dma.vmem_to_hbm [thread:$0]  (%p864_p13), %s927_s7, 384, %s374_s25, %s360_s27  }
  0x81 PF: > { %s997_s19 = sld [smem:[#allocation12_spill]]  ;;  %p516_p4 = scmp.ge.s32.totalorder %s755_s16, 2 }
  0x82   : > { %s388_s21 = sand.u32 1, %s727_s9  }
  0x83   : > { %s389_s23 = scalar_lea.sflag [#allocation4], %s388_s21 }
  0x87   : > { %p998_p8 = scmp.ne.s32.totalorder %s997_s19, 0 }
  0x89   : > { %p510_p3 = pnand %p516_p4, %p998_p8 }
  0x8b   : > { %p511_p5 = pneg %p510_p3 }
  0x8d   : > { %722 = dma.done.wait (%p511_p5), %s389_s23, 384  }
  0x8e   : > { %724 = vsyncadd (%p511_p5), %s389_s23, 4294966912  ;;  %s19_s16 = sadd.s32 1, %s755_s16   ;;  %s999_s13 = sld [smem:[#allocation11_spill]] }
  0x8f   : > { %p16_p2 = scmp.ge.s32.totalorder %s19_s16, 6   ;;  %s1000_s5 = sld [smem:[#allocation13_spill]] }
  0x90   : > { %s1001_s15 = sld [smem:[#allocation14_spill]]  ;;  %s1002_s9 = smov %s731_s10 }
  0x91   : > { %s1003_s10 = smov %s735_s11  ;;  %s1004_s11 = smov %s881_s20 }
  0x92   : > { %s1005_s12 = smov %s747_s14  ;;  %18 = sbr.rel (!%p16_p2) target bundleno = 10 (0xa), region = 78 }
  0x95   : > { %s1006_s14 = smov %s1000_s5 }
  0x97   :  { %394 = vsyncpa [#allocation3], 1 }
  0x98   :  { %396 = vsyncpa [#allocation3 + $0x1], 1 }
  0x99   :  { %397 = vsyncpa [#allocation6], 1 }
  0x9a   :  { %399 = vsyncpa [#allocation6 + $0x1], 1 }
  0x9b   :  { %400 = vsyncpa [#allocation4], 1 }
  0x9c   :  { %402 = vsyncpa [#allocation4 + $0x1], 1 }

</bundles_post_ra>
